<compile_context>
chip_gen: v5e
topology: v5e:2x2
jax: 0.10.0
libtpu: 0.0.40
codegen_flags: <defaults>
</compile_context>

<pallas_src>
import math
import functools

import jax
import jax.numpy as jnp
from jax.experimental import pallas as pl
from jax.experimental.pallas import tpu as pltpu


def _timestep_embedder_kernel(t_ref, freqs_ref, w1_ref, b1_ref, w2_ref, b2_ref, o_ref):
    half = freqs_ref.shape[1]

    t = t_ref[...]                       # (tm, 1) f32
    args = t * freqs_ref[...]            # (tm, half) f32, == t[:, None] * freqs[None]

    # Sinusoidal embedding, kept as two halves (no concat materialized).
    cos_e = jnp.cos(args).astype(w1_ref.dtype)   # bf16 MXU operand
    sin_e = jnp.sin(args).astype(w1_ref.dtype)

    # Linear(freq_dim, H): split the contraction over the cos / sin halves of W1.
    h = jnp.dot(cos_e, w1_ref[0:half, :], preferred_element_type=jnp.float32)
    h = h + jnp.dot(sin_e, w1_ref[half:2 * half, :], preferred_element_type=jnp.float32)
    h = h + b1_ref[...]                  # f32 bias, broadcast over rows

    # SiLU in f32; reciprocal goes to the EUP slot (near-free).
    h = h * pl.reciprocal(1.0 + jnp.exp(-h), approx=True)

    # Linear(H, H).
    out = jnp.dot(h.astype(w2_ref.dtype), w2_ref[...], preferred_element_type=jnp.float32)
    o_ref[...] = (out + b2_ref[...]).astype(o_ref.dtype)


def timestep_embedder_forward(t, params, frequency_embedding_size=256,
                              max_period=10000, block_rows=256):
    """t: (N,) float timesteps. Returns (N, hidden_size) float32."""
    w1, b1, w2, b2 = params
    hidden_size = w2.shape[1]
    half = frequency_embedding_size // 2
    # TODO(synk): odd frequency_embedding_size (zero-pad column in the PyTorch
    # module) is not handled; the default (256) is even.
    assert frequency_embedding_size % 2 == 0

    N = t.shape[0]
    freqs = jnp.exp(
        -math.log(max_period) * jnp.arange(half, dtype=jnp.float32) / half
    ).reshape(1, half)
    t2d = t.astype(jnp.float32).reshape(N, 1)

    if N <= block_rows:
        # Single block: full-array block shapes, no padding needed.
        tm = N
        n_pad = N
    else:
        tm = block_rows
        n_pad = pl.cdiv(N, tm) * tm
        if n_pad != N:
            t2d = jnp.pad(t2d, ((0, n_pad - N), (0, 0)))
    grid = (n_pad // tm,)

    # VMEM budget: resident weights/biases/freqs + double-buffered row tiles,
    # capped below v7x's 64 MiB physical VMEM.
    w_itemsize = jnp.dtype(w1.dtype).itemsize
    resident_bytes = (w1.size + w2.size) * w_itemsize + (b1.size + b2.size + half) * 4
    act_bytes = tm * (half + 3 * hidden_size + 1) * 4
    vmem_limit = int(min(48 << 20, max(32 << 20, 2 * resident_bytes + 4 * act_bytes)))
    # TODO(synk): for very large hidden sizes where W2 alone approaches VMEM,
    # add a second grid axis over W2's output columns with h kept resident.

    out = pl.pallas_call(
        _timestep_embedder_kernel,
        out_shape=jax.ShapeDtypeStruct((n_pad, hidden_size), jnp.float32),
        grid=grid,
        in_specs=[
            pl.BlockSpec((tm, 1), lambda i: (i, 0)),             # t rows, tiled
            pl.BlockSpec((1, half), lambda i: (0, 0)),           # freqs, resident
            pl.BlockSpec(w1.shape, lambda i: (0, 0)),            # W1, resident
            pl.BlockSpec(b1.shape, lambda i: (0, 0)),            # b1, resident
            pl.BlockSpec(w2.shape, lambda i: (0, 0)),            # W2, resident
            pl.BlockSpec(b2.shape, lambda i: (0, 0)),            # b2, resident
        ],
        out_specs=pl.BlockSpec((tm, hidden_size), lambda i: (i, 0)),
        compiler_params=pltpu.CompilerParams(
            dimension_semantics=("parallel",),
            vmem_limit_bytes=vmem_limit,
        ),
    )(t2d, freqs, w1, b1, w2, b2)
    return out[:N]


def init_params(key, hidden_size, frequency_embedding_size=256):
    k1, k2, k3, k4 = jax.random.split(key, 4)
    # nn.Linear default init: U(-1/sqrt(fan_in), 1/sqrt(fan_in)); weights stored
    # here already transposed to (in_features, out_features). Weights are kept
    # in bf16 (MXU operand dtype), biases in f32.
    lim1 = 1.0 / math.sqrt(frequency_embedding_size)
    lim2 = 1.0 / math.sqrt(hidden_size)
    w1 = jax.random.uniform(k1, (frequency_embedding_size, hidden_size),
                            jnp.float32, -lim1, lim1).astype(jnp.bfloat16)
    b1 = jax.random.uniform(k2, (1, hidden_size), jnp.float32, -lim1, lim1)
    w2 = jax.random.uniform(k3, (hidden_size, hidden_size),
                            jnp.float32, -lim2, lim2).astype(jnp.bfloat16)
    b2 = jax.random.uniform(k4, (1, hidden_size), jnp.float32, -lim2, lim2)
    return (w1, b1, w2, b2)


def reference_forward(t, params, frequency_embedding_size=256, max_period=10000):
    """Pure-JAX reference mirroring the PyTorch module (same bf16 matmul operands)."""
    half = frequency_embedding_size // 2
    freqs = jnp.exp(-math.log(max_period) * jnp.arange(half, dtype=jnp.float32) / half)
    args = t.astype(jnp.float32)[:, None] * freqs[None]
    emb = jnp.concatenate([jnp.cos(args), jnp.sin(args)], axis=-1)
    w1, b1, w2, b2 = params
    h = jnp.dot(emb.astype(w1.dtype), w1, preferred_element_type=jnp.float32) + b1
    h = h * jax.nn.sigmoid(h)
    return jnp.dot(h.astype(w2.dtype), w2, preferred_element_type=jnp.float32) + b2


if __name__ == "__main__":
    key = jax.random.PRNGKey(0)
    k_param, k_t1, k_t2 = jax.random.split(key, 3)

    hidden_size = 128
    frequency_embedding_size = 256
    params = init_params(k_param, hidden_size, frequency_embedding_size)

    # Small batch: single-block (no grid tiling) path.
    t_small = jax.random.uniform(k_t1, (8,), jnp.float32, 0.0, 1000.0)
    out_small = jax.block_until_ready(
        timestep_embedder_forward(t_small, params, frequency_embedding_size))
    ref_small = reference_forward(t_small, params, frequency_embedding_size)
    assert out_small.shape == (8, hidden_size)
    assert jnp.allclose(out_small, ref_small, atol=2e-2, rtol=2e-2)

    # Larger batch: exercises the row-tiled grid path (with padding / slicing).
    t_big = jax.random.uniform(k_t2, (300,), jnp.float32, 0.0, 1000.0)
    out_big = jax.block_until_ready(
        timestep_embedder_forward(t_big, params, frequency_embedding_size,
                                  block_rows=128))
    ref_big = reference_forward(t_big, params, frequency_embedding_size)
    assert out_big.shape == (300, hidden_size)
    assert jnp.allclose(out_big, ref_big, atol=2e-2, rtol=2e-2)

    print("KERNEL_OK")
</pallas_src>

<mosaic_0001>
module attributes {stable_mosaic.version = 11 : i64} {
  func.func @_timestep_embedder_kernel(%arg0: i32, %arg1: memref<8x1xf32, #tpu.memory_space<vmem>>, %arg2: memref<1x128xf32, #tpu.memory_space<vmem>>, %arg3: memref<256x128xbf16, #tpu.memory_space<vmem>>, %arg4: memref<1x128xf32, #tpu.memory_space<vmem>>, %arg5: memref<128x128xbf16, #tpu.memory_space<vmem>>, %arg6: memref<1x128xf32, #tpu.memory_space<vmem>>, %arg7: memref<8x128xf32, #tpu.memory_space<vmem>>) attributes {dimension_semantics = [#tpu.dimension_semantics<parallel>], iteration_bounds = array<i64: 1>, scalar_prefetch = 0 : i64, scratch_operands = 0 : i64, tpu.core_type = #tpu.core_type<tc>, window_params = [{transform_indices = @transform_0, window_bounds = array<i64: 8, 1>}, {pipeline_mode = #tpu.pipeline_mode<synchronous>, transform_indices = @transform_1, window_bounds = array<i64: 1, 128>}, {pipeline_mode = #tpu.pipeline_mode<synchronous>, transform_indices = @transform_2, window_bounds = array<i64: 256, 128>}, {pipeline_mode = #tpu.pipeline_mode<synchronous>, transform_indices = @transform_3, window_bounds = array<i64: 1, 128>}, {pipeline_mode = #tpu.pipeline_mode<synchronous>, transform_indices = @transform_4, window_bounds = array<i64: 128, 128>}, {pipeline_mode = #tpu.pipeline_mode<synchronous>, transform_indices = @transform_5, window_bounds = array<i64: 1, 128>}, {transform_indices = @transform_6, window_bounds = array<i64: 8, 128>}]} {
    %c0 = arith.constant 0 : index
    %c0_0 = arith.constant 0 : index
    %0 = vector.load %arg1[%c0, %c0_0] : memref<8x1xf32, #tpu.memory_space<vmem>>, vector<8x1xf32>
    %c0_1 = arith.constant 0 : index
    %c0_2 = arith.constant 0 : index
    %1 = vector.load %arg2[%c0_1, %c0_2] : memref<1x128xf32, #tpu.memory_space<vmem>>, vector<1x128xf32>
    %2 = vector.broadcast %0 : vector<8x1xf32> to vector<8x128xf32>
    %3 = vector.broadcast %1 : vector<1x128xf32> to vector<8x128xf32>
    %4 = arith.mulf %2, %3 : vector<8x128xf32>
    %5 = math.cos %4 : vector<8x128xf32>
    %6 = arith.truncf %5 : vector<8x128xf32> to vector<8x128xbf16>
    %7 = math.sin %4 : vector<8x128xf32>
    %8 = arith.truncf %7 : vector<8x128xf32> to vector<8x128xbf16>
    %c0_3 = arith.constant 0 : index
    %c0_4 = arith.constant 0 : index
    %9 = vector.load %arg3[%c0_3, %c0_4] : memref<256x128xbf16, #tpu.memory_space<vmem>>, vector<128x128xbf16>
    %cst = arith.constant dense<0.000000e+00> : vector<8x128xf32>
    %10 = tpu.matmul %6, %9, %cst {dimension_numbers = #tpu.dot_dimension_numbers<[1], [0], [0], [1], [0, 0, 1, 1], [], []>} : vector<8x128xbf16>, vector<128x128xbf16>, vector<8x128xf32> -> vector<8x128xf32>
    %c128 = arith.constant 128 : index
    %c0_5 = arith.constant 0 : index
    %11 = vector.load %arg3[%c128, %c0_5] : memref<256x128xbf16, #tpu.memory_space<vmem>>, vector<128x128xbf16>
    %cst_6 = arith.constant dense<0.000000e+00> : vector<8x128xf32>
    %12 = tpu.matmul %8, %11, %cst_6 {dimension_numbers = #tpu.dot_dimension_numbers<[1], [0], [0], [1], [0, 0, 1, 1], [], []>} : vector<8x128xbf16>, vector<128x128xbf16>, vector<8x128xf32> -> vector<8x128xf32>
    %13 = arith.addf %10, %12 : vector<8x128xf32>
    %c0_7 = arith.constant 0 : index
    %c0_8 = arith.constant 0 : index
    %14 = vector.load %arg4[%c0_7, %c0_8] : memref<1x128xf32, #tpu.memory_space<vmem>>, vector<1x128xf32>
    %15 = vector.broadcast %14 : vector<1x128xf32> to vector<8x128xf32>
    %16 = arith.addf %13, %15 : vector<8x128xf32>
    %cst_9 = arith.constant 0.000000e+00 : f32
    %17 = vector.broadcast %cst_9 : f32 to vector<8x128xf32>
    %18 = arith.subf %17, %16 : vector<8x128xf32>
    %19 = math.exp %18 : vector<8x128xf32>
    %cst_10 = arith.constant 1.000000e+00 : f32
    %20 = vector.broadcast %cst_10 : f32 to vector<8x128xf32>
    %21 = arith.addf %20, %19 : vector<8x128xf32>
    %22 = tpu.reciprocal %21 {approx = true} : vector<8x128xf32> -> vector<8x128xf32>
    %23 = arith.mulf %16, %22 : vector<8x128xf32>
    %24 = arith.truncf %23 : vector<8x128xf32> to vector<8x128xbf16>
    %c0_11 = arith.constant 0 : index
    %c0_12 = arith.constant 0 : index
    %25 = vector.load %arg5[%c0_11, %c0_12] : memref<128x128xbf16, #tpu.memory_space<vmem>>, vector<128x128xbf16>
    %cst_13 = arith.constant dense<0.000000e+00> : vector<8x128xf32>
    %26 = tpu.matmul %24, %25, %cst_13 {dimension_numbers = #tpu.dot_dimension_numbers<[1], [0], [0], [1], [0, 0, 1, 1], [], []>} : vector<8x128xbf16>, vector<128x128xbf16>, vector<8x128xf32> -> vector<8x128xf32>
    %c0_14 = arith.constant 0 : index
    %c0_15 = arith.constant 0 : index
    %27 = vector.load %arg6[%c0_14, %c0_15] : memref<1x128xf32, #tpu.memory_space<vmem>>, vector<1x128xf32>
    %28 = vector.broadcast %27 : vector<1x128xf32> to vector<8x128xf32>
    %29 = arith.addf %26, %28 : vector<8x128xf32>
    %c0_16 = arith.constant 0 : index
    %c0_17 = arith.constant 0 : index
    %30 = vector.load %arg7[%c0_16, %c0_17] : memref<8x128xf32, #tpu.memory_space<vmem>>, vector<8x128xf32>
    tpu.vector_store %arg7[%c0_16, %c0_17], %29 {strides = array<i32>} : memref<8x128xf32, #tpu.memory_space<vmem>>, vector<8x128xf32>,
    return
  }
  func.func @transform_0(%arg0: i32) -> (i32, i32) {
    %c0_i32 = arith.constant 0 : i32
    %c0_i32_0 = arith.constant 0 : i32
    return %arg0, %c0_i32 : i32, i32
  }
  func.func @transform_1(%arg0: i32) -> (i32, i32) {
    %c0_i32 = arith.constant 0 : i32
    %c0_i32_0 = arith.constant 0 : i32
    %c0_i32_1 = arith.constant 0 : i32
    return %c0_i32, %c0_i32_0 : i32, i32
  }
  func.func @transform_2(%arg0: i32) -> (i32, i32) {
    %c0_i32 = arith.constant 0 : i32
    %c0_i32_0 = arith.constant 0 : i32
    %c0_i32_1 = arith.constant 0 : i32
    return %c0_i32, %c0_i32_0 : i32, i32
  }
  func.func @transform_3(%arg0: i32) -> (i32, i32) {
    %c0_i32 = arith.constant 0 : i32
    %c0_i32_0 = arith.constant 0 : i32
    %c0_i32_1 = arith.constant 0 : i32
    return %c0_i32, %c0_i32_0 : i32, i32
  }
  func.func @transform_4(%arg0: i32) -> (i32, i32) {
    %c0_i32 = arith.constant 0 : i32
    %c0_i32_0 = arith.constant 0 : i32
    %c0_i32_1 = arith.constant 0 : i32
    return %c0_i32, %c0_i32_0 : i32, i32
  }
  func.func @transform_5(%arg0: i32) -> (i32, i32) {
    %c0_i32 = arith.constant 0 : i32
    %c0_i32_0 = arith.constant 0 : i32
    %c0_i32_1 = arith.constant 0 : i32
    return %c0_i32, %c0_i32_0 : i32, i32
  }
  func.func @transform_6(%arg0: i32) -> (i32, i32) {
    %c0_i32 = arith.constant 0 : i32
    %c0_i32_0 = arith.constant 0 : i32
    return %arg0, %c0_i32 : i32, i32
  }
}

</mosaic_0001>

<bundles_post_ra>
// kernel: tpu_custom_call.1
= control target key start
LH: loop header
LB: loop body
LE: loop exit
PB: predicated region body
PF: predicated region fallthrough
CT: control target
= control target key end

     0   :  { %11 = vsyncpa [#allocation3], 0  ;;  %s1006_s0 = inlined_call_operand.vmem [shape: f32[8,1], index: 0, kind: input, shape index: {}]   ;;  %s1007_s1 = inlined_call_operand.vmem [shape: f32[1,128], index: 1, kind: input, shape index: {}]   ;;  %s1008_s2 = inlined_call_operand.hbm [shape: bf16[256,128], index: 2, kind: input, shape index: {}]   ;;  %s1009_s3 = inlined_call_operand.vmem [shape: f32[1,128], index: 3, kind: input, shape index: {}]   ;;  %s1010_s4 = inlined_call_operand.hbm [shape: bf16[128,128], index: 4, kind: input, shape index: {}]   ;;  %s1011_s5 = inlined_call_operand.vmem [shape: f32[1,128], index: 5, kind: input, shape index: {}]   ;;  %s1012_s6 = inlined_call_operand.hbm [shape: f32[8,128], index: 6, kind: output, shape index: {}]  }
   0x1   :  { %12 = vsyncpa [#allocation6], 0 }
   0x2   :  { %13 = vsyncpa [#allocation4], 0  ;;  %s22_s23 = sshll.u32 %s1008_s2, 4  ;;  %s868_s24 = smov [#allocation2]   ;;  %s23_s23 = int_to_ptr.hbm [resolvable:$true] %s22_s23 }
   0x3   :  { %s24_s25 = sshll.u32 %s868_s24, 4  ;;  %s37_s28 = sshll.u32 %s1010_s4, 4  ;;  %s25_s25 = int_to_ptr.vmem [resolvable:$true] %s24_s25  ;;  %s38_s28 = int_to_ptr.hbm [resolvable:$true] %s37_s28 }
   0x4   :  { %s869_s29 = smov 64   ;;  %s870_s30 = smov 4  }
   0x5   :  { %30 = dma.hbm_to_vmem [thread:$0]  %s23_s23, 2048, %s25_s25, [#allocation3], %s869_s29, %s869_s29, %s870_s30  }
   0x6   :  { %s871_s7 = smov [#allocation5]  }
   0x7   :  { %s39_s8 = sshll.u32 %s871_s7, 4  ;;  %s40_s8 = int_to_ptr.vmem [resolvable:$true] %s39_s8 }
   0x8   :  { %45 = dma.hbm_to_vmem [thread:$0]  %s38_s28, 1024, %s40_s8, [#allocation6], %s869_s29, %s869_s29, %s870_s30  }
   0x9   :  { %862 = dma.done.wait [#allocation3], 2048  }
   0xa   :  { %863 = vsyncadd [#allocation3], 4294965248 }
   0xb   :  { %864 = dma.done.wait [#allocation6], 1024  }
   0xc   :  { %865 = vsyncadd [#allocation6], 4294966272  ;;  %v872_v0 = vmov 0   ;;  %v56_v1 = vld [vmem:[%s1006_s0] sm:$0xff]  ;;  %v761_v3 = vld [vmem:[#allocation2 + $0x78] sm:$0xff]  ;;  %s633_s16 = sshll.u32 %s1012_s6, 4  ;;  %s634_s16 = int_to_ptr.hbm [resolvable:$true] %s633_s16 }
   0xd   :  { %782 = vset.pattern.permute.xlu0 %v872_v0  ;;  %v783_v2 = vld [vmem:[%s1007_s1] ss:$0 sm:$0xff]  ;;  %v753_v4 = vld [vmem:[#allocation2 + $0x38] sm:$0xff]  ;;  %458 = vmatpush.bf16.msra.mxu0 %v761_v3  ;;  %v760_v7 = vld [vmem:[#allocation2 + $0x70] sm:$0xff]  ;;  %v873_v26 = vmov 683565275  }
   0xe   :  { %60 = vperm.xlu0 %782, %v56_v1   ;;  %519 = vmatpush.bf16.msra.mxu1 %v753_v4  ;;  %v752_v8 = vld [vmem:[#allocation2 + $0x30] sm:$0xff]  ;;  %v759_v11 = vld [vmem:[#allocation2 + $0x68] sm:$0xff]  ;;  %v758_v16 = vld [vmem:[#allocation2 + $0x60] sm:$0xff]  ;;  %v874_v28 = vmov 2475754826  }
   0xf   :  { %v751_v12 = vld [vmem:[#allocation2 + $0x28] sm:$0xff]  ;;  %v750_v17 = vld [vmem:[#allocation2 + $0x20] sm:$0xff]  ;;  %v757_v21 = vld [vmem:[#allocation2 + $0x58] sm:$0xff]  ;;  %v875_v31 = vmov 2131351028  }
  0x10   :  { %v749_v22 = vld [vmem:[#allocation2 + $0x18] sm:$0xff]  ;;  %v876_v34 = vmov 2102212464   ;;  %v756_v36 = vld [vmem:[#allocation2 + $0x50] sm:$0xff]  ;;  %v877_v38 = vmov 920167782  }
  0x11   :  { %459 = vmatpush.bf16.msra.mxu0 %v760_v7  ;;  %v878_v41 = vmov 1326507024   ;;  %v748_v43 = vld [vmem:[#allocation2 + $0x10] sm:$0xff]  ;;  %v755_v52 = vld [vmem:[#allocation2 + $0x48] sm:$0xff]  ;;  %v746_v4 = vld [vmem:[#allocation2] sm:$0xff] }
  0x12   :  { %520 = vmatpush.bf16.msra.mxu1 %v752_v8  ;;  %v747_v55 = vld [vmem:[#allocation2 + $0x8] sm:$0xff] }
  0x15   :  { %460 = vmatpush.bf16.msra.mxu0 %v759_v11 }
  0x16   :  { %521 = vmatpush.bf16.msra.mxu1 %v751_v12 }
  0x19   :  { %461 = vmatpush.bf16.msra.mxu0 %v758_v16 }
  0x1a   :  { %522 = vmatpush.bf16.msra.mxu1 %v750_v17 }
  0x1d   :  { %462 = vmatpush.bf16.msra.mxu0 %v757_v21 }
  0x1e   :  { %523 = vmatpush.bf16.msra.mxu1 %v749_v22 }
  0x21   :  { %463 = vmatpush.bf16.msra.mxu0 %v756_v36 }
  0x22   :  { %524 = vmatpush.bf16.msra.mxu1 %v748_v43 }
  0x25   :  { %464 = vmatpush.bf16.msra.mxu0 %v755_v52 }
  0x26   :  { %525 = vmatpush.bf16.msra.mxu1 %v747_v55 }
  0x2a   :  { %526 = vmatpush.bf16.msra.mxu1 %v746_v4 }
  0x80   :  { %v61_v5 = vpop.permute.xlu0 %60 }
  0x81   :  { %v928_v6 = vmul.f32 %v783_v2, %v61_v5  ;;  %v754_v2 = vld [vmem:[#allocation2 + $0x40] sm:$0xff] }
  0x82   :  { %465 = vmatpush.bf16.msra.mxu0 %v754_v2 }
  0x83   :  { %v70_v9 = vand.u32 2139095040, %v928_v6  ;;  %v67_v14 = vand.u32 2147483647, %v928_v6  ;;  %vm69_vm12 = vcmp.lt.s32.totalorder %v928_v6, 0 }
  0x85   :  { %v71_v10 = vshrl.u32 %v70_v9, 23  ;;  %v74_v18 = vand.u32 8388607, %v67_v14  ;;  %vm68_vm13 = vcmp.le.f32.partialorder %v67_v14, 0.7853982 }
  0x87   :  { %v644_v13 = vadd.s32 4294967169, %v71_v10  ;;  %v75_v24 = vor.u32 8388608, %v74_v18 }
  0x89   :  { %v77_v15 = vadd.s32 1, %v644_v13  ;;  %v949_v49 = vshll.u32 %v75_v24, 8 }
  0x8b   :  { %vm78_vm0 = vcmp.gt.s32.totalorder %v77_v15, 0  ;;  %v116_v60 = vand.u32 65535, %v949_v49  ;;  %v117_v3 = vshrl.u32 %v949_v49, 16 }
  0x8c   :  { %v79_v19 = vsel %vm78_vm0, %v77_v15, 0 }
  0x8d   :  { %v81_v20 = vand.u32 31, %v79_v19  ;;  %v936_v25 = vshrl.u32 %v79_v19, 5 }
  0x8f   :  { %v934_v23 = vsub.s32 32, %v81_v20  ;;  %v84_v27 = vshll.u32 %v873_v26, %v81_v20  ;;  %v87_v29 = vshll.u32 %v874_v28, %v81_v20  ;;  %v90_v33 = vshll.u32 %v875_v31, %v81_v20 }
  0x90   :  { %v93_v37 = vshll.u32 %v876_v34, %v81_v20  ;;  %v96_v40 = vshll.u32 %v877_v38, %v81_v20  ;;  %vm99_vm1 = vcmp.lt.s32.totalorder %v936_v25, 1  ;;  %vm102_vm2 = vcmp.lt.s32.totalorder %v936_v25, 4 }
  0x91   :  { %v85_v30 = vshrl.u32 %v874_v28, %v934_v23  ;;  %v88_v32 = vshrl.u32 %v875_v31, %v934_v23  ;;  %v91_v35 = vshrl.u32 %v876_v34, %v934_v23  ;;  %v94_v39 = vshrl.u32 %v877_v38, %v934_v23 }
  0x92   :  { %v97_v42 = vshrl.u32 %v878_v41, %v934_v23  ;;  %vm101_vm3 = vcmp.lt.s32.totalorder %v936_v25, 3  ;;  %vm100_vm4 = vcmp.lt.s32.totalorder %v936_v25, 2 }
  0x93   :  { %v944_v44 = vor.u32 %v85_v30, %v84_v27  ;;  %v946_v45 = vor.u32 %v88_v32, %v87_v29  ;;  %v92_v46 = vor.u32 %v91_v35, %v90_v33  ;;  %v95_v47 = vor.u32 %v94_v39, %v93_v37 }
  0x94   :  { %v98_v48 = vor.u32 %v97_v42, %v96_v40  ;;  %v83_v29 = vshrl.u32 %v873_v26, %v934_v23 }
  0x95   :  { %v107_v50 = vsel %vm99_vm1, %v944_v44, %v946_v45  ;;  %v111_v51 = vsel %vm99_vm1, %v946_v45, %v92_v46  ;;  %v108_v53 = vsel %vm102_vm2, %v95_v47, 920167782  ;;  %v104_v21 = vsel %vm102_vm2, %v92_v46, 2102212464 }
  0x96   :  { %v112_v54 = vsel %vm102_vm2, %v98_v48, 1326507024  ;;  %v109_v56 = vsel %vm101_vm3, %v92_v46, %v108_v53  ;;  %v103_v36 = vsel %vm99_vm1, %v83_v29, %v944_v44  ;;  %v105_v37 = vsel %vm101_vm3, %v946_v45, %v104_v21 }
  0x97   :  { %v113_v57 = vsel %vm101_vm3, %v95_v47, %v112_v54  ;;  %v110_v58 = vsel %vm100_vm4, %v107_v50, %v109_v56  ;;  %v106_v26 = vsel %vm100_vm4, %v103_v36, %v105_v37 }
  0x98   :  { %v114_v59 = vsel %vm100_vm4, %v111_v51, %v113_v57  ;;  %v140_v63 = vand.u32 65535, %v110_v58  ;;  %v141_v1 = vshrl.u32 %v110_v58, 16  ;;  %v160_v46 = vmul.u32 %v949_v49, %v106_v26 }
  0x99   :  { %v118_v61 = vand.u32 65535, %v114_v59  ;;  %v119_v62 = vshrl.u32 %v114_v59, 16  ;;  %vm210_vm4 = vweird.f32 %v928_v6 }
  0x9a   :  { %v143_v7 = vmul.u32 %v141_v1, %v116_v60  ;;  %v144_v9 = vmul.u32 %v140_v63, %v117_v3  ;;  %v142_v12 = vmul.u32 %v140_v63, %v116_v60  ;;  %v145_v16 = vmul.u32 %v141_v1, %v117_v3  ;;  %v769_v1 = vld [vmem:[#allocation5 + $0x38] sm:$0xff] }
  0x9b   :  { %v121_v5 = vmul.u32 %v119_v62, %v116_v60  ;;  %v122_v8 = vmul.u32 %v118_v61, %v117_v3  ;;  %v120_v10 = vmul.u32 %v118_v61, %v116_v60  ;;  %v123_v15 = vmul.u32 %v119_v62, %v117_v3  ;;  %612 = vmatpush.bf16.msra.mxu2 %v769_v1 }
  0x9c   :  { %v146_v13 = vshll.u32 %v143_v7, 16  ;;  %v148_v18 = vshll.u32 %v144_v9, 16  ;;  %v147_v34 = vshrl.u32 %v143_v7, 16  ;;  %v149_v40 = vshrl.u32 %v144_v9, 16 }
  0x9d   :  { %v124_v11 = vshll.u32 %v121_v5, 16  ;;  %v126_v17 = vshll.u32 %v122_v8, 16  ;;  %v125_v32 = vshrl.u32 %v121_v5, 16  ;;  %v127_v38 = vshrl.u32 %v122_v8, 16 }
  0x9e   :  { %vm150_vm6 = vc.u32 %v142_v12, %v146_v13  ;;  %v152_v20 = vadd.s32 %v146_v13, %v142_v12 }
  0x9f   :  { %vm128_vm5 = vc.u32 %v120_v10, %v124_v11  ;;  %v130_v19 = vadd.s32 %v124_v11, %v120_v10  ;;  %v151_v24 = vsel %vm150_vm6, 1, %v872_v0 }
  0xa0   :  { %v129_v22 = vsel %vm128_vm5, 1, %v872_v0  ;;  %v153_v28 = vadd.s32 %v151_v24, %v145_v16  ;;  %vm154_vm8 = vc.u32 %v152_v20, %v148_v18  ;;  %v156_v41 = vadd.s32 %v152_v20, %v148_v18 }
  0xa1   :  { %v131_v27 = vadd.s32 %v129_v22, %v123_v15  ;;  %vm132_vm7 = vc.u32 %v130_v19, %v126_v17  ;;  %v155_v31 = vsel %vm154_vm8, 1, %v872_v0 }
  0xa2   :  { %v133_v30 = vsel %vm132_vm7, 1, %v872_v0  ;;  %v157_v35 = vadd.s32 %v155_v31, %v153_v28 }
  0xa3   :  { %v135_v33 = vadd.s32 %v133_v30, %v131_v27 }
  0xa4   :  { %v158_v23 = vadd.s32 %v157_v35, %v147_v34 }
  0xa5   :  { %v136_v39 = vadd.s32 %v135_v33, %v125_v32 }
  0xa6   :  { %v159_v42 = vadd.s32 %v158_v23, %v149_v40 }
  0xa7   :  { %v137_v0 = vadd.s32 %v136_v39, %v127_v38 }
  0xa8   :  { %v163_v43 = vadd.s32 1, %v159_v42 }
  0xa9   :  { %vm162_vm9 = vc.u32 %v137_v0, %v156_v41  ;;  %v161_v56 = vadd.s32 %v156_v41, %v137_v0  ;;  %v768_v41 = vld [vmem:[#allocation5 + $0x30] sm:$0xff] }
  0xaa   :  { %v164_v47 = vsel %vm162_vm9, %v163_v43, %v159_v42  ;;  %613 = vmatpush.bf16.msra.mxu2 %v768_v41  ;;  %v767_v42 = vld [vmem:[#allocation5 + $0x28] sm:$0xff]  ;;  %v766_v43 = vld [vmem:[#allocation5 + $0x20] sm:$0xff] }
  0xab   :  { %v165_v44 = vadd.s32 %v164_v47, %v160_v46  ;;  %v765_v46 = vld [vmem:[#allocation5 + $0x18] sm:$0xff]  ;;  %v764_v47 = vld [vmem:[#allocation5 + $0x10] sm:$0xff] }
  0xad   :  { %v166_v48 = vadd.s32 536870912, %v165_v44 }
  0xae   :  { %614 = vmatpush.bf16.msra.mxu2 %v767_v42 }
  0xaf   :  { %v167_v50 = vshrl.u32 %v166_v48, 30  ;;  %v784_v48 = vld [vmem:[%s1009_s3] ss:$0 sm:$0xff]  ;;  %s879_s3 = smov [#allocation7]  }
  0xb0   :  { %s631_s13 = sshll.u32 %s879_s3, 4  ;;  %s632_s13 = int_to_ptr.vmem [resolvable:$true] %s631_s13 }
  0xb1   :  { %v168_v51 = vshll.u32 %v167_v50, 30  ;;  %v191_v8 = vsub.s32 4, %v167_v50 }
  0xb2   :  { %615 = vmatpush.bf16.msra.mxu2 %v766_v43 }
  0xb3   :  { %v169_v45 = vsub.s32 %v165_v44, %v168_v51  ;;  %v192_v13 = vsel %vm69_vm12, %v191_v8, %v167_v50  ;;  %v763_v44 = vld [vmem:[#allocation5 + $0x8] sm:$0xff] }
  0xb4   :  { %v194_v17 = vsel %vm68_vm13, 0, %v192_v13 }
  0xb5   :  { %vm170_vm10 = vcmp.lt.s32.totalorder %v169_v45, 0  ;;  %v171_v52 = vsub.s32 0, %v169_v45  ;;  %v366_v22 = vadd.s32 3, %v194_v17  ;;  %v211_v29 = vand.u32 3, %v194_v17 }
  0xb6   :  { %616 = vmatpush.bf16.msra.mxu2 %v765_v46 }
  0xb7   :  { %v172_v53 = vsel %vm170_vm10, %v171_v52, %v169_v45  ;;  %v367_v30 = vand.u32 3, %v366_v22  ;;  %vm212_vm14 = vcmp.lt.s32.totalorder %v211_v29, 2  ;;  %vm213_vm15 = vcmp.eq.s32.totalorder %v211_v29, 0 }
  0xb8   :  { %v173_v54 = vclz %v172_v53  ;;  %vm216_vm3 = vcmp.eq.s32.totalorder %v211_v29, 2 }
  0xb9   :  { %vm368_vm0 = vcmp.lt.s32.totalorder %v367_v30, 2  ;;  %vm369_vm1 = vcmp.eq.s32.totalorder %v367_v30, 0  ;;  %vm372_vm2 = vcmp.eq.s32.totalorder %v367_v30, 2 }
  0xba   :  { %v645_v55 = vadd.s32 4294967294, %v173_v54  ;;  %617 = vmatpush.bf16.msra.mxu2 %v764_v47 }
  0xbc   :  { %vm646_vm11 = vcmp.lt.s32.totalorder %v645_v55, 0 }
  0xbd   :  { %v176_v25 = vsel %vm646_vm11, 0, %v645_v55 }
  0xbe   :  { %v177_v57 = vsub.s32 32, %v176_v25  ;;  %v181_v58 = vsub.s32 4294967266, %v176_v25  ;;  %v178_v59 = vshll.u32 %v169_v45, %v176_v25  ;;  %618 = vmatpush.bf16.msra.mxu2 %v763_v44 }
  0xc0   :  { %v179_v60 = vshrl.u32 %v161_v56, %v177_v57  ;;  %v182_v61 = vadd.s32 127, %v181_v58 }
  0xc2   :  { %v180_v49 = vor.u32 %v179_v60, %v178_v59  ;;  %v183_v62 = vshll.u32 %v182_v61, 23  ;;  %v785_v61 = vld [vmem:[%s1011_s5] ss:$0 sm:$0xff] }
  0xc4   :  { %v184_v63 = vor.u32 4788187, %v183_v62  ;;  %v187_v3 = vcvt.s32.f32 %v180_v49 }
  0xc6   :  { %v185_v2 = vand.u32 2147483647, %v184_v63 }
  0xc8   :  { %v188_v4 = vmul.f32 %v187_v3, %v185_v2 }
  0xca   :  { %v189_v5 = vxor.u32 2147483648, %v188_v4 }
  0xcc   :  { %v190_v7 = vsel %vm69_vm12, %v189_v5, %v188_v4 }
  0xcd   :  { %v193_v9 = vsel %vm68_vm13, %v928_v6, %v190_v7  ;;  %v762_v6 = vld [vmem:[#allocation5] sm:$0xff] }
  0xce   :  { %v195_v10 = vmul.f32 %v193_v9, %v193_v9  ;;  %619 = vmatpush.bf16.msra.mxu2 %v762_v6 }
  0xd0   :  { %v196_v11 = vmul.f32 -0.001358992, %v195_v10  ;;  %v203_v12 = vmul.f32 -0.00019511016, %v195_v10 }
  0xd2   :  { %v197_v15 = vadd.f32 0.041655596, %v196_v11  ;;  %v204_v16 = vadd.f32 0.008332121, %v203_v12 }
  0xd4   :  { %v198_v18 = vmul.f32 %v197_v15, %v195_v10  ;;  %v205_v19 = vmul.f32 %v204_v16, %v195_v10 }
  0xd6   :  { %v199_v20 = vadd.f32 -0.4999988, %v198_v18  ;;  %v206_v21 = vadd.f32 -0.16666654, %v205_v19 }
  0xd8   :  { %v200_v24 = vmul.f32 %v199_v20, %v195_v10  ;;  %v207_v27 = vmul.f32 %v206_v21, %v195_v10 }
  0xda   :  { %v201_v28 = vadd.f32 1.0, %v200_v24  ;;  %v208_v14 = vadd.f32 1.0, %v207_v27 }
  0xdc   :  { %v209_v31 = vmul.f32 %v208_v14, %v193_v9  ;;  %v217_v32 = vxor.u32 2147483648, %v201_v28 }
  0xde   :  { %v214_v33 = vxor.u32 2147483648, %v209_v31  ;;  %v374_v35 = vsel %vm372_vm2, %v217_v32, %v209_v31  ;;  %v218_v37 = vsel %vm216_vm3, %v217_v32, %v209_v31 }
  0xe0   :  { %v371_v34 = vsel %vm369_vm1, %v201_v28, %v214_v33  ;;  %v215_v36 = vsel %vm213_vm15, %v201_v28, %v214_v33 }
  0xe1   :  { %v375_v38 = vsel %vm368_vm0, %v371_v34, %v374_v35  ;;  %v219_v39 = vsel %vm212_vm14, %v215_v36, %v218_v37 }
  0xe2   :  { %v376_v40 = vsel %vm210_vm4, nan, %v375_v38  ;;  %v220_v23 = vsel %vm210_vm4, nan, %v219_v39 }
  0xe3   :  { %v377_v26 = vpack.c.bf16 %v376_v40, %v376_v40  ;;  %v221_v0 = vpack.c.bf16 %v220_v23, %v220_v23 }
  0xe5   :  { %466 = vmatmul.bf16.vlgmr.msra.gmra.mxu0 %v377_v26  ;;  %527 = vmatmul.bf16.vlgmr.msra.gmra.mxu1 %v221_v0 }
 0x162   :  { %v467_v50 = vpop.f32.mrf.mxu0  ;;  %v528_v51 = vpop.f32.mrf.mxu1 }
 0x163   :  { %v529_v45 = vadd.f32 %v528_v51, %v467_v50 }
 0x165   :  { %v536_v52 = vadd.f32 %v784_v48, %v529_v45 }
 0x167   :  { %v537_v53 = vsub.f32 0.0, %v536_v52 }
 0x169   :  { %v538_v54 = vmul.f32 1.442695, %v537_v53 }
 0x16a   :  { %v469_v55 = vpop.f32.mrf.mxu0  ;;  %v530_v25 = vpop.f32.mrf.mxu1 }
 0x16b   :  { %786 = vpow2.f32 %v538_v54 }
 0x171   :  { %v787_v56 = vpop.eup %786 }
 0x172   :  { %v540_v57 = vadd.f32 1.0, %v787_v56 }
 0x174   :  { %788 = vrcp.f32 %v540_v57 }
 0x17a   :  { %v789_v58 = vpop.eup %788 }
 0x17b   :  { %v542_v59 = vmul.f32 %v789_v58, %v536_v52 }
 0x17d   :  { %v543_v60 = vpack.c.bf16 %v542_v59, %v542_v59 }
 0x17f   :  { %620 = vmatmul.bf16.vlgmr.msra.gmra.mxu2 %v543_v60 }
 0x202   :  { %v621_v49 = vpop.f32.mrf.mxu2 }
 0x203   :  { %v622_v62 = vadd.f32 %v785_v61, %v621_v49 }
 0x205   :  { %625 = vst [vmem:[#allocation7] sm:$0xff] %v622_v62 }
 0x206   :  { %636 = dma.vmem_to_hbm [thread:$0]  %s632_s13, 128, %s634_s16, [#allocation4]  }
 0x20a   :  { %v623_v63 = vpop.f32.mrf.mxu2 }
 0x20b   :  { %866 = dma.done.wait [#allocation4], 128  }
 0x20c   :  { %867 = vsyncadd [#allocation4], 4294967168 }
 0x20d   :  { %641 = vsyncpa [#allocation3], 1 }
 0x20e   :  { %642 = vsyncpa [#allocation6], 1 }
 0x20f   :  { %643 = vsyncpa [#allocation4], 1 }

</bundles_post_ra>
